<compile_context>
chip_gen: v5e
topology: v5e:2x2
jax: 0.10.0
libtpu: 0.0.40
codegen_flags: <defaults>
</compile_context>

<pallas_src>
import jax
import jax.numpy as jnp
from jax.experimental import pallas as pl
from jax.experimental.pallas import tpu as pltpu

NEG_SLOPE = 0.1   # matches nn.LeakyReLU(0.1) in the PyTorch module
LANE = 128
BN_EPS = 1e-5


def _round_up(n, m):
    return ((n + m - 1) // m) * m


def _leaky_relu(x, slope=NEG_SLOPE):
    return jnp.where(x > 0, x, slope * x)


# -----------------------------------------------------------------------------
# Kernel: one batch tile through the whole 4-layer MLP (intermediates never
# touch HBM).
# -----------------------------------------------------------------------------
def widecrypto_kernel(
    x_ref,
    w1_ref, b1_ref,
    w2_ref, b2_ref,
    w3_ref, b3_ref,
    w4_ref, b4_ref,
    out_ref,
):
    # fc1 (+ folded BN1) -> leaky_relu    (dropout = identity in eval mode)
    h = jnp.dot(x_ref[...], w1_ref[...], preferred_element_type=jnp.float32)
    h = _leaky_relu(h + b1_ref[...])

    # fc2 (+ folded BN2) -> leaky_relu
    h = jnp.dot(h.astype(jnp.bfloat16), w2_ref[...],
                preferred_element_type=jnp.float32)
    h = _leaky_relu(h + b2_ref[...])

    # fc3 (+ folded BN3) -> leaky_relu
    h = jnp.dot(h.astype(jnp.bfloat16), w3_ref[...],
                preferred_element_type=jnp.float32)
    h = _leaky_relu(h + b3_ref[...])

    # fc4 (output columns zero-padded to a lane-dense 128)
    out = jnp.dot(h.astype(jnp.bfloat16), w4_ref[...],
                  preferred_element_type=jnp.float32)
    out_ref[...] = (out + b4_ref[...]).astype(out_ref.dtype)


# -----------------------------------------------------------------------------
# Wrapper
# -----------------------------------------------------------------------------
def widecrypto_forward(x, kp, out_dim, *, block_b=256):
    """x: (B, input_dim) float32.  kp: folded kernel params (see fold_for_kernel)."""
    B, D = x.shape
    TB = min(block_b, _round_up(B, 16))
    B_pad = _round_up(B, TB)
    x_p = x if B_pad == B else jnp.pad(x, ((0, B_pad - B), (0, 0)))
    x_bf16 = x_p.astype(jnp.bfloat16)

    out_pad = kp["w4"].shape[1]          # lane-dense padded output width
    grid = (B_pad // TB,)

    def rep(a):  # weight/bias spec: constant block index -> stays VMEM-resident
        return pl.BlockSpec(a.shape, lambda i: (0, 0))

    in_specs = [
        pl.BlockSpec((TB, D), lambda i: (i, 0)),
        rep(kp["w1"]), rep(kp["b1"]),
        rep(kp["w2"]), rep(kp["b2"]),
        rep(kp["w3"]), rep(kp["b3"]),
        rep(kp["w4"]), rep(kp["b4"]),
    ]
    out_spec = pl.BlockSpec((TB, out_pad), lambda i: (i, 0))

    flops = 2 * B_pad * (D * 512 + 512 * 256 + 256 * 128 + 128 * out_pad)
    bytes_accessed = (
        int(x_bf16.size) * 2
        + B_pad * out_pad * 4
        + sum(int(kp[k].size) * kp[k].dtype.itemsize for k in kp)
    )

    out_padded = pl.pallas_call(
        widecrypto_kernel,
        out_shape=jax.ShapeDtypeStruct((B_pad, out_pad), jnp.float32),
        grid=grid,
        in_specs=in_specs,
        out_specs=out_spec,
        compiler_params=pltpu.CompilerParams(
            dimension_semantics=("parallel",),
        ),
        cost_estimate=pl.CostEstimate(
            flops=flops, transcendentals=0, bytes_accessed=bytes_accessed),
    )(
        x_bf16,
        kp["w1"], kp["b1"],
        kp["w2"], kp["b2"],
        kp["w3"], kp["b3"],
        kp["w4"], kp["b4"],
    )
    return out_padded[:B, :out_dim]


# -----------------------------------------------------------------------------
# Parameter construction (PyTorch-style) and BN folding
# -----------------------------------------------------------------------------
def make_raw_params(key, input_dim, output_dim):
    """PyTorch-like init: Linear weights stored as (in, out); BN stats for bn1..bn3."""
    dims = [(input_dim, 512), (512, 256), (256, 128), (128, output_dim)]
    keys = jax.random.split(key, 4 * 2 + 3 * 4)
    p = {}
    ki = 0
    for idx, (fin, fout) in enumerate(dims, start=1):
        bound = 1.0 / float(fin) ** 0.5
        p[f"w{idx}"] = jax.random.uniform(
            keys[ki], (fin, fout), jnp.float32, -bound, bound); ki += 1
        p[f"b{idx}"] = jax.random.uniform(
            keys[ki], (1, fout), jnp.float32, -bound, bound); ki += 1
    for idx, (_, fout) in enumerate(dims[:3], start=1):
        p[f"gamma{idx}"] = 1.0 + 0.1 * jax.random.normal(keys[ki], (1, fout), jnp.float32); ki += 1
        p[f"beta{idx}"] = 0.1 * jax.random.normal(keys[ki], (1, fout), jnp.float32); ki += 1
        p[f"mean{idx}"] = 0.05 * jax.random.normal(keys[ki], (1, fout), jnp.float32); ki += 1
        p[f"var{idx}"] = 1.0 + 0.1 * jax.random.uniform(keys[ki], (1, fout), jnp.float32); ki += 1
    return p


def fold_for_kernel(raw, eps=BN_EPS):
    """Fold eval-mode BN into Linear; bf16 weights, f32 biases, lane-pad layer 4."""
    kp = {}
    for idx in (1, 2, 3):
        inv_std = 1.0 / jnp.sqrt(raw[f"var{idx}"] + eps)
        s = raw[f"gamma{idx}"] * inv_std                    # (1, fout) scale
        t = raw[f"beta{idx}"] - raw[f"mean{idx}"] * s       # (1, fout) shift
        kp[f"w{idx}"] = (raw[f"w{idx}"] * s).astype(jnp.bfloat16)
        kp[f"b{idx}"] = raw[f"b{idx}"] * s + t
    out_dim = raw["w4"].shape[1]
    pad = (-out_dim) % LANE
    kp["w4"] = jnp.pad(raw["w4"], ((0, 0), (0, pad))).astype(jnp.bfloat16)
    kp["b4"] = jnp.pad(raw["b4"], ((0, 0), (0, pad)))
    return kp


# -----------------------------------------------------------------------------
# References
# -----------------------------------------------------------------------------
def reference_forward_f32(x, raw, eps=BN_EPS):
    """Plain-JAX f32 reference matching the PyTorch module in eval mode."""
    def bn(h, idx):
        return (h - raw[f"mean{idx}"]) / jnp.sqrt(raw[f"var{idx}"] + eps) \
            * raw[f"gamma{idx}"] + raw[f"beta{idx}"]
    h = _leaky_relu(bn(x @ raw["w1"] + raw["b1"], 1))
    h = _leaky_relu(bn(h @ raw["w2"] + raw["b2"], 2))
    h = _leaky_relu(bn(h @ raw["w3"] + raw["b3"], 3))
    return h @ raw["w4"] + raw["b4"]


def reference_forward_bf16(x, kp, out_dim):
    """Reference with the same bf16-matmul / f32-accumulate casts as the kernel."""
    h = jnp.dot(x.astype(jnp.bfloat16), kp["w1"],
                preferred_element_type=jnp.float32) + kp["b1"]
    h = _leaky_relu(h)
    h = jnp.dot(h.astype(jnp.bfloat16), kp["w2"],
                preferred_element_type=jnp.float32) + kp["b2"]
    h = _leaky_relu(h)
    h = jnp.dot(h.astype(jnp.bfloat16), kp["w3"],
                preferred_element_type=jnp.float32) + kp["b3"]
    h = _leaky_relu(h)
    out = jnp.dot(h.astype(jnp.bfloat16), kp["w4"],
                  preferred_element_type=jnp.float32) + kp["b4"]
    return out[:, :out_dim]


if __name__ == "__main__":
    key = jax.random.PRNGKey(0)
    k_x, k_p = jax.random.split(key)

    batch, input_dim, output_dim = 8, 32, 16
    x = jax.random.normal(k_x, (batch, input_dim), jnp.float32)

    raw = make_raw_params(k_p, input_dim, output_dim)
    kp = fold_for_kernel(raw)

    out = widecrypto_forward(x, kp, output_dim)
    out = jax.block_until_ready(out)
    assert out.shape == (batch, output_dim)

    # Tight check against a reference using the same bf16/f32 numerics.
    ref_bf16 = reference_forward_bf16(x, kp, output_dim)
    assert jnp.allclose(out, ref_bf16, atol=2e-3, rtol=2e-3), \
        "mismatch vs bf16 reference"

    # Looser check against the exact f32 eval-mode module semantics.
    ref_f32 = reference_forward_f32(x, raw)
    assert jnp.allclose(out, ref_f32, atol=5e-2, rtol=5e-2), \
        "mismatch vs f32 reference"

    print("KERNEL_OK")
</pallas_src>

<mosaic_0001>
module attributes {stable_mosaic.version = 11 : i64} {
  func.func @widecrypto_kernel(%arg0: i32, %arg1: memref<16x32xbf16, #tpu.memory_space<vmem>>, %arg2: memref<32x512xbf16, #tpu.memory_space<vmem>>, %arg3: memref<1x512xf32, #tpu.memory_space<vmem>>, %arg4: memref<512x256xbf16, #tpu.memory_space<vmem>>, %arg5: memref<1x256xf32, #tpu.memory_space<vmem>>, %arg6: memref<256x128xbf16, #tpu.memory_space<vmem>>, %arg7: memref<1x128xf32, #tpu.memory_space<vmem>>, %arg8: memref<128x128xbf16, #tpu.memory_space<vmem>>, %arg9: memref<1x128xf32, #tpu.memory_space<vmem>>, %arg10: memref<16x128xf32, #tpu.memory_space<vmem>>) attributes {dimension_semantics = [#tpu.dimension_semantics<parallel>], iteration_bounds = array<i64: 1>, scalar_prefetch = 0 : i64, scratch_operands = 0 : i64, tpu.core_type = #tpu.core_type<tc>, window_params = [{transform_indices = @transform_0, window_bounds = array<i64: 16, 32>}, {pipeline_mode = #tpu.pipeline_mode<synchronous>, transform_indices = @transform_1, window_bounds = array<i64: 32, 512>}, {pipeline_mode = #tpu.pipeline_mode<synchronous>, transform_indices = @transform_2, window_bounds = array<i64: 1, 512>}, {pipeline_mode = #tpu.pipeline_mode<synchronous>, transform_indices = @transform_3, window_bounds = array<i64: 512, 256>}, {pipeline_mode = #tpu.pipeline_mode<synchronous>, transform_indices = @transform_4, window_bounds = array<i64: 1, 256>}, {pipeline_mode = #tpu.pipeline_mode<synchronous>, transform_indices = @transform_5, window_bounds = array<i64: 256, 128>}, {pipeline_mode = #tpu.pipeline_mode<synchronous>, transform_indices = @transform_6, window_bounds = array<i64: 1, 128>}, {pipeline_mode = #tpu.pipeline_mode<synchronous>, transform_indices = @transform_7, window_bounds = array<i64: 128, 128>}, {pipeline_mode = #tpu.pipeline_mode<synchronous>, transform_indices = @transform_8, window_bounds = array<i64: 1, 128>}, {transform_indices = @transform_9, window_bounds = array<i64: 16, 128>}]} {
    %c0 = arith.constant 0 : index
    %c0_0 = arith.constant 0 : index
    %0 = vector.load %arg1[%c0, %c0_0] : memref<16x32xbf16, #tpu.memory_space<vmem>>, vector<16x32xbf16>
    %c0_1 = arith.constant 0 : index
    %c0_2 = arith.constant 0 : index
    %1 = vector.load %arg2[%c0_1, %c0_2] : memref<32x512xbf16, #tpu.memory_space<vmem>>, vector<32x512xbf16>
    %cst = arith.constant dense<0.000000e+00> : vector<16x512xf32>
    %2 = tpu.matmul %0, %1, %cst {dimension_numbers = #tpu.dot_dimension_numbers<[1], [0], [0], [1], [0, 0, 1, 1], [], []>} : vector<16x32xbf16>, vector<32x512xbf16>, vector<16x512xf32> -> vector<16x512xf32>
    %c0_3 = arith.constant 0 : index
    %c0_4 = arith.constant 0 : index
    %3 = vector.load %arg3[%c0_3, %c0_4] : memref<1x512xf32, #tpu.memory_space<vmem>>, vector<1x512xf32>
    %4 = vector.broadcast %3 : vector<1x512xf32> to vector<16x512xf32>
    %5 = arith.addf %2, %4 : vector<16x512xf32>
    %cst_5 = arith.constant 0.000000e+00 : f32
    %6 = vector.broadcast %cst_5 : f32 to vector<16x512xf32>
    %7 = arith.cmpf ogt, %5, %6 : vector<16x512xf32>
    %cst_6 = arith.constant 1.000000e-01 : f32
    %8 = vector.broadcast %cst_6 : f32 to vector<16x512xf32>
    %9 = arith.mulf %8, %5 : vector<16x512xf32>
    %10 = arith.select %7, %5, %9 : vector<16x512xi1>, vector<16x512xf32>
    %11 = arith.truncf %10 : vector<16x512xf32> to vector<16x512xbf16>
    %c0_7 = arith.constant 0 : index
    %c0_8 = arith.constant 0 : index
    %12 = vector.load %arg4[%c0_7, %c0_8] : memref<512x256xbf16, #tpu.memory_space<vmem>>, vector<512x256xbf16>
    %cst_9 = arith.constant dense<0.000000e+00> : vector<16x256xf32>
    %13 = tpu.matmul %11, %12, %cst_9 {dimension_numbers = #tpu.dot_dimension_numbers<[1], [0], [0], [1], [0, 0, 1, 1], [], []>} : vector<16x512xbf16>, vector<512x256xbf16>, vector<16x256xf32> -> vector<16x256xf32>
    %c0_10 = arith.constant 0 : index
    %c0_11 = arith.constant 0 : index
    %14 = vector.load %arg5[%c0_10, %c0_11] : memref<1x256xf32, #tpu.memory_space<vmem>>, vector<1x256xf32>
    %15 = vector.broadcast %14 : vector<1x256xf32> to vector<16x256xf32>
    %16 = arith.addf %13, %15 : vector<16x256xf32>
    %cst_12 = arith.constant 0.000000e+00 : f32
    %17 = vector.broadcast %cst_12 : f32 to vector<16x256xf32>
    %18 = arith.cmpf ogt, %16, %17 : vector<16x256xf32>
    %cst_13 = arith.constant 1.000000e-01 : f32
    %19 = vector.broadcast %cst_13 : f32 to vector<16x256xf32>
    %20 = arith.mulf %19, %16 : vector<16x256xf32>
    %21 = arith.select %18, %16, %20 : vector<16x256xi1>, vector<16x256xf32>
    %22 = arith.truncf %21 : vector<16x256xf32> to vector<16x256xbf16>
    %c0_14 = arith.constant 0 : index
    %c0_15 = arith.constant 0 : index
    %23 = vector.load %arg6[%c0_14, %c0_15] : memref<256x128xbf16, #tpu.memory_space<vmem>>, vector<256x128xbf16>
    %cst_16 = arith.constant dense<0.000000e+00> : vector<16x128xf32>
    %24 = tpu.matmul %22, %23, %cst_16 {dimension_numbers = #tpu.dot_dimension_numbers<[1], [0], [0], [1], [0, 0, 1, 1], [], []>} : vector<16x256xbf16>, vector<256x128xbf16>, vector<16x128xf32> -> vector<16x128xf32>
    %c0_17 = arith.constant 0 : index
    %c0_18 = arith.constant 0 : index
    %25 = vector.load %arg7[%c0_17, %c0_18] : memref<1x128xf32, #tpu.memory_space<vmem>>, vector<1x128xf32>
    %26 = vector.broadcast %25 : vector<1x128xf32> to vector<16x128xf32>
    %27 = arith.addf %24, %26 : vector<16x128xf32>
    %cst_19 = arith.constant 0.000000e+00 : f32
    %28 = vector.broadcast %cst_19 : f32 to vector<16x128xf32>
    %29 = arith.cmpf ogt, %27, %28 : vector<16x128xf32>
    %cst_20 = arith.constant 1.000000e-01 : f32
    %30 = vector.broadcast %cst_20 : f32 to vector<16x128xf32>
    %31 = arith.mulf %30, %27 : vector<16x128xf32>
    %32 = arith.select %29, %27, %31 : vector<16x128xi1>, vector<16x128xf32>
    %33 = arith.truncf %32 : vector<16x128xf32> to vector<16x128xbf16>
    %c0_21 = arith.constant 0 : index
    %c0_22 = arith.constant 0 : index
    %34 = vector.load %arg8[%c0_21, %c0_22] : memref<128x128xbf16, #tpu.memory_space<vmem>>, vector<128x128xbf16>
    %cst_23 = arith.constant dense<0.000000e+00> : vector<16x128xf32>
    %35 = tpu.matmul %33, %34, %cst_23 {dimension_numbers = #tpu.dot_dimension_numbers<[1], [0], [0], [1], [0, 0, 1, 1], [], []>} : vector<16x128xbf16>, vector<128x128xbf16>, vector<16x128xf32> -> vector<16x128xf32>
    %c0_24 = arith.constant 0 : index
    %c0_25 = arith.constant 0 : index
    %36 = vector.load %arg9[%c0_24, %c0_25] : memref<1x128xf32, #tpu.memory_space<vmem>>, vector<1x128xf32>
    %37 = vector.broadcast %36 : vector<1x128xf32> to vector<16x128xf32>
    %38 = arith.addf %35, %37 : vector<16x128xf32>
    %c0_26 = arith.constant 0 : index
    %c0_27 = arith.constant 0 : index
    %39 = vector.load %arg10[%c0_26, %c0_27] : memref<16x128xf32, #tpu.memory_space<vmem>>, vector<16x128xf32>
    tpu.vector_store %arg10[%c0_26, %c0_27], %38 {strides = array<i32>} : memref<16x128xf32, #tpu.memory_space<vmem>>, vector<16x128xf32>,
    return
  }
  func.func @transform_0(%arg0: i32) -> (i32, i32) {
    %c0_i32 = arith.constant 0 : i32
    %c0_i32_0 = arith.constant 0 : i32
    return %arg0, %c0_i32 : i32, i32
  }
  func.func @transform_1(%arg0: i32) -> (i32, i32) {
    %c0_i32 = arith.constant 0 : i32
    %c0_i32_0 = arith.constant 0 : i32
    %c0_i32_1 = arith.constant 0 : i32
    return %c0_i32, %c0_i32_0 : i32, i32
  }
  func.func @transform_2(%arg0: i32) -> (i32, i32) {
    %c0_i32 = arith.constant 0 : i32
    %c0_i32_0 = arith.constant 0 : i32
    %c0_i32_1 = arith.constant 0 : i32
    return %c0_i32, %c0_i32_0 : i32, i32
  }
  func.func @transform_3(%arg0: i32) -> (i32, i32) {
    %c0_i32 = arith.constant 0 : i32
    %c0_i32_0 = arith.constant 0 : i32
    %c0_i32_1 = arith.constant 0 : i32
    return %c0_i32, %c0_i32_0 : i32, i32
  }
  func.func @transform_4(%arg0: i32) -> (i32, i32) {
    %c0_i32 = arith.constant 0 : i32
    %c0_i32_0 = arith.constant 0 : i32
    %c0_i32_1 = arith.constant 0 : i32
    return %c0_i32, %c0_i32_0 : i32, i32
  }
  func.func @transform_5(%arg0: i32) -> (i32, i32) {
    %c0_i32 = arith.constant 0 : i32
    %c0_i32_0 = arith.constant 0 : i32
    %c0_i32_1 = arith.constant 0 : i32
    return %c0_i32, %c0_i32_0 : i32, i32
  }
  func.func @transform_6(%arg0: i32) -> (i32, i32) {
    %c0_i32 = arith.constant 0 : i32
    %c0_i32_0 = arith.constant 0 : i32
    %c0_i32_1 = arith.constant 0 : i32
    return %c0_i32, %c0_i32_0 : i32, i32
  }
  func.func @transform_7(%arg0: i32) -> (i32, i32) {
    %c0_i32 = arith.constant 0 : i32
    %c0_i32_0 = arith.constant 0 : i32
    %c0_i32_1 = arith.constant 0 : i32
    return %c0_i32, %c0_i32_0 : i32, i32
  }
  func.func @transform_8(%arg0: i32) -> (i32, i32) {
    %c0_i32 = arith.constant 0 : i32
    %c0_i32_0 = arith.constant 0 : i32
    %c0_i32_1 = arith.constant 0 : i32
    return %c0_i32, %c0_i32_0 : i32, i32
  }
  func.func @transform_9(%arg0: i32) -> (i32, i32) {
    %c0_i32 = arith.constant 0 : i32
    %c0_i32_0 = arith.constant 0 : i32
    return %arg0, %c0_i32 : i32, i32
  }
}

</mosaic_0001>

<bundles_post_ra>
// kernel: tpu_custom_call.1
= control target key start
LH: loop header
LB: loop body
LE: loop exit
PB: predicated region body
PF: predicated region fallthrough
CT: control target
= control target key end

     0   :  { %14 = vsyncpa [#allocation3], 0  ;;  %s1865_s0 = inlined_call_operand.hbm [shape: bf16[16,32], index: 0, kind: input, shape index: {}]   ;;  %s1866_s1 = inlined_call_operand.hbm [shape: bf16[32,512], index: 1, kind: input, shape index: {}]   ;;  %s1867_s2 = inlined_call_operand.hbm [shape: f32[1,512], index: 2, kind: input, shape index: {}]   ;;  %s1868_s3 = inlined_call_operand.hbm [shape: bf16[512,256], index: 3, kind: input, shape index: {}]   ;;  %s1869_s4 = inlined_call_operand.vmem [shape: f32[1,256], index: 4, kind: input, shape index: {}]   ;;  %s1870_s5 = inlined_call_operand.hbm [shape: bf16[256,128], index: 5, kind: input, shape index: {}]   ;;  %s1871_s6 = inlined_call_operand.vmem [shape: f32[1,128], index: 6, kind: input, shape index: {}]   ;;  %s1872_s7 = inlined_call_operand.hbm [shape: bf16[128,128], index: 7, kind: input, shape index: {}]   ;;  %s1873_s8 = inlined_call_operand.vmem [shape: f32[1,128], index: 8, kind: input, shape index: {}]   ;;  %s1874_s9 = inlined_call_operand.hbm [shape: f32[16,128], index: 9, kind: output, shape index: {}]  }
   0x1   :  { %15 = vsyncpa [#allocation6], 0 }
   0x2   :  { %16 = vsyncpa [#allocation9], 0 }
   0x3   :  { %17 = vsyncpa [#allocation12], 0  ;;  %s36_s11 = sshll.u32 %s1866_s1, 4  ;;  %s37_s11 = int_to_ptr.hbm [resolvable:$true] %s36_s11 }
   0x4   :  { %18 = vsyncpa [#allocation4], 0  ;;  %s1750_s12 = smov [#allocation5]   ;;  %s60_s16 = sshll.u32 %s1868_s3, 4  ;;  %s61_s16 = int_to_ptr.hbm [resolvable:$true] %s60_s16 }
   0x5   :  { %s38_s13 = sshll.u32 %s1750_s12, 4  ;;  %s1751_s17 = smov 256   ;;  %s39_s13 = int_to_ptr.vmem [resolvable:$true] %s38_s13 }
   0x6   :  { %s1752_s18 = smov 16   ;;  %s1753_s19 = smov [#allocation8]  }
   0x7   :  { %44 = dma.hbm_to_vmem [thread:$0]  %s37_s11, 1024, %s39_s13, [#allocation6], %s1751_s17, %s1751_s17, %s1752_s18  }
   0x8   :  { %s62_s20 = sshll.u32 %s1753_s19, 4  ;;  %s1754_s21 = smov 128   ;;  %s63_s20 = int_to_ptr.vmem [resolvable:$true] %s62_s20 }
   0x9   :  { %s1755_s22 = smov 8   ;;  %s23_s24 = sshll.u32 %s1865_s0, 4  ;;  %s24_s24 = int_to_ptr.hbm [resolvable:$true] %s23_s24 }
   0xa   :  { %68 = dma.hbm_to_vmem [thread:$0]  %s61_s16, 8192, %s63_s20, [#allocation9], %s1754_s21, %s1754_s21, %s1755_s22  }
   0xb   :  { %s1756_s25 = smov [#allocation2]   ;;  %s50_s28 = sshll.u32 %s1867_s2, 4  ;;  %s51_s28 = int_to_ptr.hbm [resolvable:$true] %s50_s28 }
   0xc   :  { %s25_s3 = sshll.u32 %s1756_s25, 4  ;;  %s1757_s29 = smov 64   ;;  %s26_s3 = int_to_ptr.vmem [resolvable:$true] %s25_s3 }
   0xd   :  { %s1758_s30 = smov 4   ;;  %s1759_s10 = smov [#allocation7]  }
   0xe   :  { %31 = dma.hbm_to_vmem [thread:$0]  %s24_s24, 128, %s26_s3, [#allocation3], %s1757_s29, %s1757_s29, %s1758_s30  }
   0xf   :  { %s52_s11 = sshll.u32 %s1759_s10, 4  ;;  %s75_s14 = sshll.u32 %s1870_s5, 4  ;;  %s53_s11 = int_to_ptr.vmem [resolvable:$true] %s52_s11  ;;  %s76_s14 = int_to_ptr.hbm [resolvable:$true] %s75_s14 }
  0x10   :  { %55 = dma.hbm_to_vmem [thread:$0]  %s51_s28, 64, %s53_s11, [#allocation6]  }
  0x11   :  { %s90_s16 = sshll.u32 %s1872_s7, 4  ;;  %s1760_s17 = smov [#allocation10]   ;;  %s91_s16 = int_to_ptr.hbm [resolvable:$true] %s90_s16 }
  0x12   :  { %s77_s18 = sshll.u32 %s1760_s17, 4  ;;  %s1761_s2 = smov [#allocation11]   ;;  %s78_s18 = int_to_ptr.vmem [resolvable:$true] %s77_s18 }
  0x13   :  { %83 = dma.hbm_to_vmem [thread:$0]  %s76_s14, 2048, %s78_s18, [#allocation9], %s1757_s29, %s1757_s29, %s1758_s30  }
  0x14   :  { %s92_s19 = sshll.u32 %s1761_s2, 4  ;;  %s93_s19 = int_to_ptr.vmem [resolvable:$true] %s92_s19 }
  0x15   :  { %98 = dma.hbm_to_vmem [thread:$0]  %s91_s16, 1024, %s93_s19, [#allocation12], %s1757_s29, %s1757_s29, %s1758_s30  }
  0x16   :  { %1740 = dma.done.wait [#allocation3], 128  }
  0x17   :  { %1741 = vsyncadd [#allocation3], 4294967168 }
  0x18   :  { %1742 = dma.done.wait [#allocation6], 1088  }
  0x19   :  { %1743 = vsyncadd [#allocation6], 4294966208 }
  0x1a   :  { %1744 = dma.done.wait [#allocation9], 10240  }
  0x1b   :  { %1745 = vsyncadd [#allocation9], 4294957056 }
  0x1c   :  { %1746 = dma.done.wait [#allocation12], 1024  }
  0x1d   :  { %1747 = vsyncadd [#allocation12], 4294966272  ;;  %v1090_v0 = vld [vmem:[#allocation5 + $0x20] sm:$0xf]  ;;  %v1467_v1 = vld [vmem:[#allocation5 + $0x2c] sm:$0xf0] }
  0x1e   :  { %v1465_v2 = vld [vmem:[#allocation5 + $0x24] sm:$0xf]  ;;  %v1091_v3 = vor.u32 %v1467_v1, %v1090_v0  ;;  %v1092_v4 = vld [vmem:[#allocation5 + $0x30] sm:$0xf0]  ;;  %v1098_v5 = vld [vmem:[#allocation5 + $0x28] sm:$0xf] }
  0x1f   :  { %v1468_v6 = vld [vmem:[#allocation5 + $0x34] sm:$0xf0]  ;;  %v1095_v7 = vor.u32 %v1465_v2, %v1092_v4  ;;  %v1074_v9 = vld [vmem:[#allocation5] sm:$0xf]  ;;  %v1463_v10 = vld [vmem:[#allocation5 + $0xc] sm:$0xf0] }
  0x20   :  { %v1099_v8 = vor.u32 %v1468_v6, %v1098_v5  ;;  %v1461_v11 = vld [vmem:[#allocation5 + $0x4] sm:$0xf]  ;;  %201 = vmatpush.bf16.msra.mxu3 %v1091_v3  ;;  %v1075_v12 = vor.u32 %v1463_v10, %v1074_v9  ;;  %v1076_v13 = vld [vmem:[#allocation5 + $0x10] sm:$0xf0]  ;;  %v1082_v14 = vld [vmem:[#allocation5 + $0x8] sm:$0xf] }
  0x21   :  { %v1464_v15 = vld [vmem:[#allocation5 + $0x14] sm:$0xf0]  ;;  %215 = vmatpush.bf16.msra.mxu1 %v1095_v7  ;;  %v1079_v16 = vor.u32 %v1461_v11, %v1076_v13  ;;  %vm191_vm0 = vcmask 261120   ;;  %v1466_v19 = vld [vmem:[#allocation5 + $0x2c] sm:$0xf]  ;;  %s1052_s26 = sshll.u32 %s1874_s9, 4  ;;  %s1053_s26 = int_to_ptr.hbm [resolvable:$true] %s1052_s26 }
  0x22   :  { %229 = vmatpush.bf16.msra.mxu2 %v1099_v8  ;;  %v1083_v17 = vor.u32 %v1464_v15, %v1082_v14  ;;  %v1834_v18 = vld [vmem:[#allocation2] sm:$0xff]  ;;  %v1462_v22 = vld [vmem:[#allocation5 + $0xc] sm:$0xf]  ;;  %v1230_v24 = vld [vmem:[#allocation8 + $0xf0] sm:$0xf] }
  0x23   :  { %v1100_v20 = vld [vmem:[#allocation5 + $0x38] sm:$0xf0]  ;;  %v1222_v26 = vld [vmem:[#allocation8 + $0xe0] sm:$0xf]  ;;  %v1498_v27 = vld [vmem:[#allocation8 + $0xe4] sm:$0xf0] }
  0x24   :  { %v1103_v21 = vor.u32 %v1466_v19, %v1100_v20  ;;  %v1084_v23 = vld [vmem:[#allocation5 + $0x18] sm:$0xf0]  ;;  %202 = vmatpush.bf16.msra.mxu3 %v1075_v12  ;;  %v1166_v29 = vld [vmem:[#allocation8 + $0x70] sm:$0xf]  ;;  %v1223_v35 = vor.u32 %v1498_v27, %v1222_v26  ;;  %v1158_v37 = vld [vmem:[#allocation8 + $0x60] sm:$0xf] }
  0x25   :  { %v1500_v25 = vld [vmem:[#allocation8 + $0xf4] sm:$0xf0]  ;;  %v1294_v31 = vld [vmem:[#allocation8 + $0x170] sm:$0xf]  ;;  %216 = vmatpush.bf16.msra.mxu1 %v1079_v16  ;;  %v1087_v34 = vor.u32 %v1462_v22, %v1084_v23  ;;  %v1482_v38 = vld [vmem:[#allocation8 + $0x64] sm:$0xf0] }
  0x26   :  { %v1231_v28 = vor.u32 %v1500_v25, %v1230_v24  ;;  %v1484_v30 = vld [vmem:[#allocation8 + $0x74] sm:$0xf0]  ;;  %230 = vmatpush.bf16.msra.mxu2 %v1083_v17  ;;  %v1286_v39 = vld [vmem:[#allocation8 + $0x160] sm:$0xf]  ;;  %v1214_v40 = vld [vmem:[#allocation8 + $0xd0] sm:$0xf]  ;;  %v1159_v42 = vor.u32 %v1482_v38, %v1158_v37 }
  0x27   :  { %v1167_v32 = vor.u32 %v1484_v30, %v1166_v29  ;;  %v1516_v33 = vld [vmem:[#allocation8 + $0x174] sm:$0xf0]  ;;  %1104 = vmatmul.msk.bf16.vlgmr.msra.gmra.mxu3 %vm191_vm0, %v1834_v18  ;;  %v1514_v43 = vld [vmem:[#allocation8 + $0x164] sm:$0xf0]  ;;  %v1150_v44 = vld [vmem:[#allocation8 + $0x50] sm:$0xf] }
  0x28   :  { %243 = vmatpush.bf16.msrb.mxu3 %v1103_v21  ;;  %v1295_v36 = vor.u32 %v1516_v33, %v1294_v31  ;;  %v1496_v41 = vld [vmem:[#allocation8 + $0xd4] sm:$0xf0]  ;;  %1105 = vmatmul.msk.bf16.vlgmr.msra.gmra.mxu1 %vm191_vm0, %v1834_v18  ;;  %v1287_v46 = vor.u32 %v1514_v43, %v1286_v39  ;;  %v1278_v48 = vld [vmem:[#allocation8 + $0x150] sm:$0xf]  ;;  %v1206_v50 = vld [vmem:[#allocation8 + $0xc0] sm:$0xf] }
  0x29   :  { %683 = vmatpush.bf16.msrb.mxu1 %v1231_v28  ;;  %669 = vmatpush.bf16.msra.mxu0 %v1167_v32  ;;  %v1480_v45 = vld [vmem:[#allocation8 + $0x54] sm:$0xf0]  ;;  %v1215_v47 = vor.u32 %v1496_v41, %v1214_v40  ;;  %v1494_v51 = vld [vmem:[#allocation8 + $0xc4] sm:$0xf0]  ;;  %v1142_v53 = vld [vmem:[#allocation8 + $0x40] sm:$0xf] }
  0x2a   :  { %1106 = vmatmul.msk.bf16.vlgmr.msra.gmra.mxu2 %vm191_vm0, %v1834_v18  ;;  %v1512_v49 = vld [vmem:[#allocation8 + $0x154] sm:$0xf0]  ;;  %v1151_v52 = vor.u32 %v1480_v45, %v1150_v44  ;;  %v1478_v54 = vld [vmem:[#allocation8 + $0x44] sm:$0xf0]  ;;  %v1358_v56 = vld [vmem:[#allocation8 + $0x1f0] sm:$0xf]  ;;  %v1207_v58 = vor.u32 %v1494_v51, %v1206_v50 }
  0x2b   :  { %697 = vmatpush.bf16.msrb.mxu2 %v1295_v36  ;;  %v1279_v55 = vor.u32 %v1512_v49, %v1278_v48  ;;  %v1532_v57 = vld [vmem:[#allocation8 + $0x1f4] sm:$0xf0]  ;;  %v1270_v59 = vld [vmem:[#allocation8 + $0x140] sm:$0xf]  ;;  %v1510_v60 = vld [vmem:[#allocation8 + $0x144] sm:$0xf0]  ;;  %v1143_v0 = vor.u32 %v1478_v54, %v1142_v53 }
  0x2c   :  { %244 = vmatpush.bf16.msrb.mxu3 %v1087_v34  ;;  %v1359_v61 = vor.u32 %v1532_v57, %v1358_v56  ;;  %v1198_v62 = vld [vmem:[#allocation8 + $0xb0] sm:$0xf]  ;;  %v1492_v63 = vld [vmem:[#allocation8 + $0xb4] sm:$0xf0]  ;;  %v1350_v3 = vld [vmem:[#allocation8 + $0x1e0] sm:$0xf]  ;;  %v1271_v5 = vor.u32 %v1510_v60, %v1270_v59 }
  0x2d   :  { %684 = vmatpush.bf16.msrb.mxu1 %v1223_v35  ;;  %670 = vmatpush.bf16.msra.mxu0 %v1159_v42  ;;  %v1134_v1 = vld [vmem:[#allocation8 + $0x30] sm:$0xf]  ;;  %v1476_v2 = vld [vmem:[#allocation8 + $0x34] sm:$0xf0]  ;;  %v1530_v4 = vld [vmem:[#allocation8 + $0x1e4] sm:$0xf0]  ;;  %v1199_v7 = vor.u32 %v1492_v63, %v1198_v62 }
  0x2e   :  { %v1351_v6 = vor.u32 %v1530_v4, %v1350_v3  ;;  %v1262_v8 = vld [vmem:[#allocation8 + $0x130] sm:$0xf]  ;;  %v1508_v9 = vld [vmem:[#allocation8 + $0x134] sm:$0xf0]  ;;  %v1190_v10 = vld [vmem:[#allocation8 + $0xa0] sm:$0xf]  ;;  %v1135_v12 = vor.u32 %v1476_v2, %v1134_v1 }
  0x2f   :  { %698 = vmatpush.bf16.msrb.mxu2 %v1287_v46  ;;  %v1490_v11 = vld [vmem:[#allocation8 + $0xa4] sm:$0xf0]  ;;  %v1126_v13 = vld [vmem:[#allocation8 + $0x20] sm:$0xf]  ;;  %v1263_v15 = vor.u32 %v1508_v9, %v1262_v8  ;;  %v1182_v20 = vld [vmem:[#allocation8 + $0x90] sm:$0xf] }
  0x30   :  { %711 = vmatpush.bf16.msra.mxu3 %v1359_v61  ;;  %v1474_v14 = vld [vmem:[#allocation8 + $0x24] sm:$0xf0]  ;;  %v1191_v16 = vor.u32 %v1490_v11, %v1190_v10  ;;  %v1254_v17 = vld [vmem:[#allocation8 + $0x120] sm:$0xf]  ;;  %v1488_v21 = vld [vmem:[#allocation8 + $0x94] sm:$0xf0] }
  0x31   :  { %685 = vmatpush.bf16.msrb.mxu1 %v1215_v47  ;;  %671 = vmatpush.bf16.msra.mxu0 %v1151_v52  ;;  %v1506_v19 = vld [vmem:[#allocation8 + $0x124] sm:$0xf0]  ;;  %v1127_v22 = vor.u32 %v1474_v14, %v1126_v13  ;;  %v1183_v24 = vor.u32 %v1488_v21, %v1182_v20  ;;  %v1174_v25 = vld [vmem:[#allocation8 + $0x80] sm:$0xf]  ;;  %v1499_v28 = vld [vmem:[#allocation8 + $0xf4] sm:$0xf] }
  0x32   :  { %v1255_v23 = vor.u32 %v1506_v19, %v1254_v17  ;;  %v1486_v26 = vld [vmem:[#allocation8 + $0x84] sm:$0xf0]  ;;  %v1232_v29 = vld [vmem:[#allocation8 + $0xf8] sm:$0xf0]  ;;  %v1118_v31 = vld [vmem:[#allocation8 + $0x10] sm:$0xf] }
  0x33   :  { %699 = vmatpush.bf16.msrb.mxu2 %v1279_v55  ;;  %v1175_v27 = vor.u32 %v1486_v26, %v1174_v25  ;;  %v1235_v30 = vor.u32 %v1499_v28, %v1232_v29  ;;  %v1472_v32 = vld [vmem:[#allocation8 + $0x14] sm:$0xf0]  ;;  %v1342_v35 = vld [vmem:[#allocation8 + $0x1d0] sm:$0xf]  ;;  %v1497_v39 = vld [vmem:[#allocation8 + $0xe4] sm:$0xf] }
  0x34   :  { %712 = vmatpush.bf16.msra.mxu3 %v1351_v6  ;;  %v1119_v33 = vor.u32 %v1472_v32, %v1118_v31  ;;  %v1504_v34 = vld [vmem:[#allocation8 + $0x114] sm:$0xf0]  ;;  %v1224_v40 = vld [vmem:[#allocation8 + $0xe8] sm:$0xf0]  ;;  %v1110_v42 = vld [vmem:[#allocation8] sm:$0xf] }
  0x35   :  { %686 = vmatpush.bf16.msrb.mxu1 %v1207_v58  ;;  %672 = vmatpush.bf16.msra.mxu0 %v1143_v0  ;;  %v1528_v36 = vld [vmem:[#allocation8 + $0x1d4] sm:$0xf0]  ;;  %v1227_v41 = vor.u32 %v1497_v39, %v1224_v40  ;;  %v1470_v43 = vld [vmem:[#allocation8 + $0x4] sm:$0xf0]  ;;  %v1238_v45 = vld [vmem:[#allocation8 + $0x100] sm:$0xf] }
  0x36   :  { %v1343_v38 = vor.u32 %v1528_v36, %v1342_v35  ;;  %v1111_v44 = vor.u32 %v1470_v43, %v1110_v42  ;;  %v1502_v46 = vld [vmem:[#allocation8 + $0x104] sm:$0xf0]  ;;  %v1334_v47 = vld [vmem:[#allocation8 + $0x1c0] sm:$0xf]  ;;  %v1483_v50 = vld [vmem:[#allocation8 + $0x74] sm:$0xf] }
  0x37   :  { %700 = vmatpush.bf16.msrb.mxu2 %v1271_v5  ;;  %1107 = vmatmul.msk.bf16.vlgmr.msrb.gmra.mxu3 %vm191_vm0, %v1834_v18  ;;  %v1246_v18 = vld [vmem:[#allocation8 + $0x110] sm:$0xf]  ;;  %v1239_v48 = vor.u32 %v1502_v46, %v1238_v45  ;;  %v1526_v49 = vld [vmem:[#allocation8 + $0x1c4] sm:$0xf0]  ;;  %v1168_v51 = vld [vmem:[#allocation8 + $0x78] sm:$0xf0] }
  0x38   :  { %v1247_v37 = vor.u32 %v1504_v34, %v1246_v18  ;;  %713 = vmatpush.bf16.msra.mxu3 %v1343_v38  ;;  %v1335_v52 = vor.u32 %v1526_v49, %v1334_v47  ;;  %v1171_v53 = vor.u32 %v1483_v50, %v1168_v51  ;;  %v1515_v54 = vld [vmem:[#allocation8 + $0x174] sm:$0xf]  ;;  %v1296_v55 = vld [vmem:[#allocation8 + $0x178] sm:$0xf0]  ;;  %v1326_v59 = vld [vmem:[#allocation8 + $0x1b0] sm:$0xf] }
  0x39   :  { %687 = vmatpush.bf16.msrb.mxu1 %v1199_v7  ;;  %673 = vmatpush.bf16.msra.mxu0 %v1135_v12  ;;  %v1495_v56 = vld [vmem:[#allocation8 + $0xd4] sm:$0xf]  ;;  %v1299_v57 = vor.u32 %v1515_v54, %v1296_v55  ;;  %v1216_v58 = vld [vmem:[#allocation8 + $0xd8] sm:$0xf0]  ;;  %v1524_v60 = vld [vmem:[#allocation8 + $0x1b4] sm:$0xf0] }
  0x3a   :  { %v1219_v61 = vor.u32 %v1495_v56, %v1216_v58  ;;  %v1327_v62 = vor.u32 %v1524_v60, %v1326_v59  ;;  %v1481_v63 = vld [vmem:[#allocation8 + $0x64] sm:$0xf]  ;;  %v1160_v0 = vld [vmem:[#allocation8 + $0x68] sm:$0xf0]  ;;  %v1318_v8 = vld [vmem:[#allocation8 + $0x1a0] sm:$0xf] }
  0x3b   :  { %701 = vmatpush.bf16.msrb.mxu2 %v1263_v15  ;;  %v1163_v1 = vor.u32 %v1481_v63, %v1160_v0  ;;  %v1513_v2 = vld [vmem:[#allocation8 + $0x164] sm:$0xf]  ;;  %v1288_v3 = vld [vmem:[#allocation8 + $0x168] sm:$0xf0]  ;;  %v1522_v9 = vld [vmem:[#allocation8 + $0x1a4] sm:$0xf0] }
  0x3c   :  { %714 = vmatpush.bf16.msra.mxu3 %v1335_v52  ;;  %v1291_v4 = vor.u32 %v1513_v2, %v1288_v3  ;;  %v1493_v5 = vld [vmem:[#allocation8 + $0xc4] sm:$0xf]  ;;  %v1208_v6 = vld [vmem:[#allocation8 + $0xc8] sm:$0xf0]  ;;  %v1319_v10 = vor.u32 %v1522_v9, %v1318_v8  ;;  %v1479_v11 = vld [vmem:[#allocation8 + $0x54] sm:$0xf] }
  0x3d   :  { %688 = vmatpush.bf16.msrb.mxu1 %v1191_v16  ;;  %674 = vmatpush.bf16.msra.mxu0 %v1127_v22  ;;  %v1211_v7 = vor.u32 %v1493_v5, %v1208_v6  ;;  %v1152_v12 = vld [vmem:[#allocation8 + $0x58] sm:$0xf0]  ;;  %v1511_v13 = vld [vmem:[#allocation8 + $0x154] sm:$0xf]  ;;  %v1310_v21 = vld [vmem:[#allocation8 + $0x190] sm:$0xf] }
  0x3e   :  { %v1155_v14 = vor.u32 %v1479_v11, %v1152_v12  ;;  %v1280_v15 = vld [vmem:[#allocation8 + $0x158] sm:$0xf0]  ;;  %v1491_v17 = vld [vmem:[#allocation8 + $0xb4] sm:$0xf]  ;;  %v1520_v22 = vld [vmem:[#allocation8 + $0x194] sm:$0xf0] }
  0x3f   :  { %702 = vmatpush.bf16.msrb.mxu2 %v1255_v23  ;;  %v1283_v16 = vor.u32 %v1511_v13, %v1280_v15  ;;  %v1200_v19 = vld [vmem:[#allocation8 + $0xb8] sm:$0xf0]  ;;  %v1311_v23 = vor.u32 %v1520_v22, %v1310_v21  ;;  %v1144_v25 = vld [vmem:[#allocation8 + $0x48] sm:$0xf0]  ;;  %v1509_v26 = vld [vmem:[#allocation8 + $0x144] sm:$0xf] }
  0x40   :  { %715 = vmatpush.bf16.msra.mxu3 %v1327_v62  ;;  %v1203_v20 = vor.u32 %v1491_v17, %v1200_v19  ;;  %v1272_v28 = vld [vmem:[#allocation8 + $0x148] sm:$0xf0]  ;;  %v1489_v29 = vld [vmem:[#allocation8 + $0xa4] sm:$0xf]  ;;  %v1302_v18 = vld [vmem:[#allocation8 + $0x180] sm:$0xf] }
  0x41   :  { %689 = vmatpush.bf16.msrb.mxu1 %v1183_v24  ;;  %675 = vmatpush.bf16.msra.mxu0 %v1119_v33  ;;  %v1477_v24 = vld [vmem:[#allocation8 + $0x44] sm:$0xf]  ;;  %v1275_v31 = vor.u32 %v1509_v26, %v1272_v28  ;;  %v1518_v33 = vld [vmem:[#allocation8 + $0x184] sm:$0xf0]  ;;  %v1475_v35 = vld [vmem:[#allocation8 + $0x34] sm:$0xf] }
  0x42   :  { %v1303_v34 = vor.u32 %v1518_v33, %v1302_v18  ;;  %v1136_v36 = vld [vmem:[#allocation8 + $0x38] sm:$0xf0]  ;;  %v1531_v40 = vld [vmem:[#allocation8 + $0x1f4] sm:$0xf]  ;;  %v1473_v47 = vld [vmem:[#allocation8 + $0x24] sm:$0xf] }
  0x43   :  { %703 = vmatpush.bf16.msrb.mxu2 %v1247_v37  ;;  %v1507_v37 = vld [vmem:[#allocation8 + $0x134] sm:$0xf]  ;;  %v1139_v38 = vor.u32 %v1475_v35, %v1136_v36  ;;  %v1264_v39 = vld [vmem:[#allocation8 + $0x138] sm:$0xf0]  ;;  %v1505_v49 = vld [vmem:[#allocation8 + $0x124] sm:$0xf] }
  0x44   :  { %716 = vmatpush.bf16.msra.mxu3 %v1319_v10  ;;  %v1267_v42 = vor.u32 %v1507_v37, %v1264_v39  ;;  %v1184_v45 = vld [vmem:[#allocation8 + $0x98] sm:$0xf0]  ;;  %v1256_v51 = vld [vmem:[#allocation8 + $0x128] sm:$0xf0]  ;;  %v1529_v52 = vld [vmem:[#allocation8 + $0x1e4] sm:$0xf] }
  0x45   :  { %690 = vmatpush.bf16.msrb.mxu1 %v1175_v27  ;;  %676 = vmatpush.bf16.msra.mxu0 %v1111_v44  ;;  %v1147_v27 = vor.u32 %v1477_v24, %v1144_v25  ;;  %v1487_v44 = vld [vmem:[#allocation8 + $0x94] sm:$0xf]  ;;  %v1259_v54 = vor.u32 %v1505_v49, %v1256_v51  ;;  %v1485_v56 = vld [vmem:[#allocation8 + $0x84] sm:$0xf]  ;;  %v1120_v60 = vld [vmem:[#allocation8 + $0x18] sm:$0xf0] }
  0x46   :  { %v1187_v46 = vor.u32 %v1487_v44, %v1184_v45  ;;  %v1471_v59 = vld [vmem:[#allocation8 + $0x14] sm:$0xf]  ;;  %v1248_v63 = vld [vmem:[#allocation8 + $0x118] sm:$0xf0]  ;;  %v1112_v8 = vld [vmem:[#allocation8 + $0x8] sm:$0xf0] }
  0x47   :  { %704 = vmatpush.bf16.msrb.mxu2 %v1239_v48  ;;  %v1128_v48 = vld [vmem:[#allocation8 + $0x28] sm:$0xf0]  ;;  %v1123_v62 = vor.u32 %v1471_v59, %v1120_v60  ;;  %v1527_v0 = vld [vmem:[#allocation8 + $0x1d4] sm:$0xf]  ;;  %v1844_v2 = vld [vmem:[#allocation7] sm:$0xf] }
  0x48   :  { %717 = vmatpush.bf16.msra.mxu3 %v1311_v23  ;;  %v1131_v50 = vor.u32 %v1473_v47, %v1128_v48  ;;  %v139_v5 = vperm.slane %v1844_v2, 1  ;;  %v1501_v9 = vld [vmem:[#allocation8 + $0x104] sm:$0xf]  ;;  %v1240_v11 = vld [vmem:[#allocation8 + $0x108] sm:$0xf0]  ;;  %v140_v21 = vperm.slane %v1844_v2, 2 }
  0x49   :  { %739 = vmatpush.bf16.msra.mxu1 %v1235_v30  ;;  %725 = vmatpush.bf16.msrb.mxu0 %v1171_v53  ;;  %v1192_v30 = vld [vmem:[#allocation8 + $0xa8] sm:$0xf0]  ;;  %v1525_v12 = vld [vmem:[#allocation8 + $0x1c4] sm:$0xf]  ;;  %v1523_v17 = vld [vmem:[#allocation8 + $0x1b4] sm:$0xf] }
  0x4a   :  { %v1195_v32 = vor.u32 %v1489_v29, %v1192_v30  ;;  %v1352_v53 = vld [vmem:[#allocation8 + $0x1e8] sm:$0xf0]  ;;  %v1328_v19 = vld [vmem:[#allocation8 + $0x1b8] sm:$0xf0]  ;;  %v138_v23 = vperm.slane %v1844_v2, 0 }
  0x4b   :  { %753 = vmatpush.bf16.msra.mxu2 %v1299_v57  ;;  %v1355_v55 = vor.u32 %v1529_v52, %v1352_v53  ;;  %v1176_v57 = vld [vmem:[#allocation8 + $0x88] sm:$0xf0]  ;;  %v1331_v22 = vor.u32 %v1523_v17, %v1328_v19  ;;  %v1521_v25 = vld [vmem:[#allocation8 + $0x1a4] sm:$0xf]  ;;  %v1519_v18 = vld [vmem:[#allocation8 + $0x194] sm:$0xf] }
  0x4c   :  { %718 = vmatpush.bf16.msra.mxu3 %v1303_v34  ;;  %v1179_v58 = vor.u32 %v1485_v56, %v1176_v57  ;;  %v1336_v13 = vld [vmem:[#allocation8 + $0x1c8] sm:$0xf0]  ;;  %v1312_v33 = vld [vmem:[#allocation8 + $0x198] sm:$0xf0]  ;;  %v141_v57 = vperm.slane %v1844_v2, 3 }
  0x4d   :  { %740 = vmatpush.bf16.msra.mxu1 %v1227_v41  ;;  %726 = vmatpush.bf16.msrb.mxu0 %v1163_v1  ;;  %v1360_v41 = vld [vmem:[#allocation8 + $0x1f8] sm:$0xf0]  ;;  %v1339_v15 = vor.u32 %v1525_v12, %v1336_v13  ;;  %v1320_v26 = vld [vmem:[#allocation8 + $0x1a8] sm:$0xf0]  ;;  %v1315_v39 = vor.u32 %v1519_v18, %v1312_v33  ;;  %v1533_v12 = vld [vmem:[#allocation10] sm:$0xff] }
  0x4e   :  { %v1363_v43 = vor.u32 %v1531_v40, %v1360_v41  ;;  %v1344_v1 = vld [vmem:[#allocation8 + $0x1d8] sm:$0xf0]  ;;  %v1517_v40 = vld [vmem:[#allocation8 + $0x184] sm:$0xf]  ;;  %v1304_v45 = vld [vmem:[#allocation8 + $0x188] sm:$0xf0] }
  0x4f   :  { %754 = vmatpush.bf16.msra.mxu2 %v1291_v4  ;;  %v1347_v4 = vor.u32 %v1527_v0, %v1344_v1  ;;  %v1538_v2 = vld [vmem:[#allocation10 + $0x28] sm:$0xff]  ;;  %v1545_v13 = vld [vmem:[#allocation10 + $0x60] sm:$0xff]  ;;  %v343_v19 = vld [vmem:[%s1869_s4] sm:$0x3] }
  0x50   :  { %767 = vmatpush.bf16.msrb.mxu3 %v1363_v43 }
  0x51   :  { %741 = vmatpush.bf16.msra.mxu1 %v1219_v61  ;;  %727 = vmatpush.bf16.msrb.mxu0 %v1155_v14  ;;  %v1503_v61 = vld [vmem:[#allocation8 + $0x114] sm:$0xf]  ;;  %v1243_v14 = vor.u32 %v1501_v9, %v1240_v11  ;;  %v1546_v11 = vld [vmem:[#allocation10 + $0x68] sm:$0xff] }
  0x52   :  { %v1251_v3 = vor.u32 %v1503_v61, %v1248_v63  ;;  %v1547_v9 = vld [vmem:[#allocation10 + $0x70] sm:$0xff] }
  0x53   :  { %755 = vmatpush.bf16.msra.mxu2 %v1283_v16 }
  0x54   :  { %768 = vmatpush.bf16.msrb.mxu3 %v1355_v55 }
  0x55   :  { %742 = vmatpush.bf16.msra.mxu1 %v1211_v7  ;;  %728 = vmatpush.bf16.msrb.mxu0 %v1147_v27  ;;  %v1469_v7 = vld [vmem:[#allocation8 + $0x4] sm:$0xf] }
  0x56   :  { %v1115_v10 = vor.u32 %v1469_v7, %v1112_v8  ;;  %v1548_v7 = vld [vmem:[#allocation10 + $0x78] sm:$0xff]  ;;  %v1535_v8 = vld [vmem:[#allocation10 + $0x10] sm:$0xff] }
  0x57   :  { %756 = vmatpush.bf16.msra.mxu2 %v1275_v31  ;;  %v1323_v31 = vor.u32 %v1521_v25, %v1320_v26 }
  0x58   :  { %769 = vmatpush.bf16.msrb.mxu3 %v1347_v4  ;;  %v1539_v4 = vld [vmem:[#allocation10 + $0x30] sm:$0xff] }
  0x59   :  { %743 = vmatpush.bf16.msra.mxu1 %v1203_v20  ;;  %729 = vmatpush.bf16.msrb.mxu0 %v1139_v38 }
  0x5b   :  { %757 = vmatpush.bf16.msra.mxu2 %v1267_v42 }
  0x5c   :  { %770 = vmatpush.bf16.msrb.mxu3 %v1339_v15  ;;  %v1544_v15 = vld [vmem:[#allocation10 + $0x58] sm:$0xff] }
  0x5d   :  { %744 = vmatpush.bf16.msra.mxu1 %v1195_v32  ;;  %730 = vmatpush.bf16.msrb.mxu0 %v1131_v50  ;;  %v1307_v50 = vor.u32 %v1517_v40, %v1304_v45 }
  0x5f   :  { %758 = vmatpush.bf16.msra.mxu2 %v1259_v54 }
  0x60   :  { %771 = vmatpush.bf16.msrb.mxu3 %v1331_v22  ;;  %v345_v22 = vperm.slane %v343_v19, 0 }
  0x61   :  { %745 = vmatpush.bf16.msra.mxu1 %v1187_v46  ;;  %731 = vmatpush.bf16.msrb.mxu0 %v1123_v62 }
  0x63   :  { %759 = vmatpush.bf16.msra.mxu2 %v1251_v3  ;;  %v1540_v3 = vld [vmem:[#allocation10 + $0x38] sm:$0xff] }
  0x64   :  { %772 = vmatpush.bf16.msrb.mxu3 %v1323_v31 }
  0x65   :  { %746 = vmatpush.bf16.msra.mxu1 %v1179_v58  ;;  %732 = vmatpush.bf16.msrb.mxu0 %v1115_v10  ;;  %v1534_v10 = vld [vmem:[#allocation10 + $0x8] sm:$0xff] }
  0x67   :  { %760 = vmatpush.bf16.msra.mxu2 %v1243_v14 }
  0x68   :  { %773 = vmatpush.bf16.msrb.mxu3 %v1315_v39 }
  0x6c   :  { %774 = vmatpush.bf16.msrb.mxu3 %v1307_v50 }
  0xa5   :  { %v218_v6 = vpop.f32.mrf.mxu1 }
  0xa6   :  { %v219_v16 = vadd.f32 %v218_v6, %v139_v5  ;;  %v1536_v6 = vld [vmem:[#allocation10 + $0x18] sm:$0xff] }
  0xa8   :  { %v260_v27 = vmul.f32 0.1, %v219_v16  ;;  %vm252_vm1 = vcmp.gt.f32.partialorder %v219_v16, 0.0 }
  0xaa   :  { %v204_v20 = vpop.f32.mrf.mxu3  ;;  %v268_v35 = vsel %vm252_vm1, %v219_v16, %v260_v27  ;;  %v1543_v16 = vld [vmem:[#allocation10 + $0x50] sm:$0xff] }
  0xab   :  { %v205_v32 = vadd.f32 %v204_v20, %v138_v23 }
  0xad   :  { %v232_v24 = vpop.f32.mrf.mxu2  ;;  %v220_v28 = vpop.f32.mrf.mxu1  ;;  %v259_v41 = vmul.f32 0.1, %v205_v32  ;;  %vm251_vm4 = vcmp.gt.f32.partialorder %v205_v32, 0.0 }
  0xae   :  { %v233_v29 = vadd.f32 %v232_v24, %v140_v21  ;;  %v221_v30 = vadd.f32 %v220_v28, %v139_v5  ;;  %v1537_v5 = vld [vmem:[#allocation10 + $0x20] sm:$0xff] }
  0xaf   :  { %v267_v51 = vsel %vm251_vm4, %v205_v32, %v259_v41  ;;  %v1541_v24 = vld [vmem:[#allocation10 + $0x40] sm:$0xff] }
  0xb0   :  { %vm256_vm2 = vcmp.gt.f32.partialorder %v221_v30, 0.0  ;;  %v264_v34 = vmul.f32 0.1, %v221_v30  ;;  %v261_v36 = vmul.f32 0.1, %v233_v29  ;;  %vm253_vm3 = vcmp.gt.f32.partialorder %v233_v29, 0.0 }
  0xb2   :  { %v206_v37 = vpop.f32.mrf.mxu3  ;;  %v272_v38 = vsel %vm256_vm2, %v221_v30, %v264_v34  ;;  %v269_v49 = vsel %vm253_vm3, %v233_v29, %v261_v36  ;;  %v346_v36 = vperm.slane %v343_v19, 1 }
  0xb3   :  { %v207_v42 = vadd.f32 %v206_v37, %v138_v23  ;;  %v276_v44 = vpack.c.bf16 %v272_v38, %v268_v35 }
  0xb5   :  { %v234_v43 = vpop.f32.mrf.mxu2  ;;  %v263_v47 = vmul.f32 0.1, %v207_v42  ;;  %691 = vmatmul.bf16.vlgmr.msrb.gmra.mxu1 %v276_v44  ;;  %vm255_vm5 = vcmp.gt.f32.partialorder %v207_v42, 0.0 }
  0xb6   :  { %v235_v46 = vadd.f32 %v234_v43, %v140_v21  ;;  %941 = vmatpush.bf16.msrb.mxu1 %v1548_v7  ;;  %v1542_v21 = vld [vmem:[#allocation10 + $0x48] sm:$0xff] }
  0xb7   :  { %v271_v52 = vsel %vm255_vm5, %v207_v42, %v263_v47 }
  0xb8   :  { %vm257_vm6 = vcmp.gt.f32.partialorder %v235_v46, 0.0  ;;  %v265_v48 = vmul.f32 0.1, %v235_v46  ;;  %v275_v53 = vpack.c.bf16 %v271_v52, %v267_v51 }
  0xba   :  { %v273_v54 = vsel %vm257_vm6, %v235_v46, %v265_v48  ;;  %v246_v56 = vpop.f32.mrf.mxu3  ;;  %677 = vmatmul.bf16.vlgmr.msra.gmra.mxu0 %v275_v53  ;;  %942 = vmatpush.bf16.msrb.mxu1 %v1547_v9 }
  0xbb   :  { %v277_v55 = vpack.c.bf16 %v273_v54, %v269_v49  ;;  %v247_v58 = vadd.f32 %v246_v56, %v141_v57  ;;  %927 = vmatpush.bf16.msra.mxu0 %v1540_v3  ;;  %v1553_v3 = vld [vmem:[#allocation11 + $0x20] sm:$0xff] }
  0xbd   :  { %705 = vmatmul.bf16.vlgmr.msrb.gmra.mxu2 %v277_v55  ;;  %v262_v60 = vmul.f32 0.1, %v247_v58  ;;  %vm254_vm7 = vcmp.gt.f32.partialorder %v247_v58, 0.0 }
  0xbe   :  { %943 = vmatpush.bf16.msrb.mxu1 %v1546_v11 }
  0xbf   :  { %v270_v63 = vsel %vm254_vm7, %v247_v58, %v262_v60  ;;  %928 = vmatpush.bf16.msra.mxu0 %v1539_v4  ;;  %v1552_v4 = vld [vmem:[#allocation11 + $0x18] sm:$0xff] }
  0xc2   :  { %v248_v59 = vpop.f32.mrf.mxu3  ;;  %944 = vmatpush.bf16.msrb.mxu1 %v1545_v13 }
  0xc3   :  { %v249_v61 = vadd.f32 %v248_v59, %v141_v57  ;;  %929 = vmatpush.bf16.msra.mxu0 %v1538_v2  ;;  %v1551_v2 = vld [vmem:[#allocation11 + $0x10] sm:$0xff] }
  0xc5   :  { %vm258_vm8 = vcmp.gt.f32.partialorder %v249_v61, 0.0  ;;  %v266_v62 = vmul.f32 0.1, %v249_v61  ;;  %747 = vmatmul.bf16.vlgmr.msra.gmra.mxu1 %v276_v44 }
  0xc6   :  { %945 = vmatpush.bf16.msrb.mxu1 %v1544_v15 }
  0xc7   :  { %v274_v0 = vsel %vm258_vm8, %v249_v61, %v266_v62  ;;  %930 = vmatpush.bf16.msra.mxu0 %v1537_v5  ;;  %v1550_v5 = vld [vmem:[#allocation11 + $0x8] sm:$0xff] }
  0xc8   :  { %v278_v1 = vpack.c.bf16 %v274_v0, %v270_v63  ;;  %v1556_v63 = vld [vmem:[#allocation11 + $0x38] sm:$0xff]  ;;  %v1555_v0 = vld [vmem:[#allocation11 + $0x30] sm:$0xff] }
  0xc9   :  { %1030 = vmatpush.bf16.msrb.mxu2 %v1556_v63 }
  0xca   :  { %719 = vmatmul.bf16.vlgmr.msra.gmra.mxu3 %v278_v1  ;;  %733 = vmatmul.bf16.vlgmr.msrb.gmra.mxu0 %v275_v53 }
  0xcb   :  { %931 = vmatpush.bf16.msra.mxu0 %v1536_v6  ;;  %946 = vmatpush.bf16.msrb.mxu1 %v1543_v16  ;;  %v1549_v6 = vld [vmem:[#allocation11] sm:$0xff] }
  0xcd   :  { %761 = vmatmul.bf16.vlgmr.msra.gmra.mxu2 %v277_v55 }
  0xce   :  { %1031 = vmatpush.bf16.msrb.mxu2 %v1555_v0 }
  0xcf   :  { %932 = vmatpush.bf16.msra.mxu0 %v1535_v8  ;;  %947 = vmatpush.bf16.msrb.mxu1 %v1542_v21  ;;  %v1570_v8 = vld [vmem:[%s1871_s6] ss:$0 sm:$0xff]  ;;  %s1762_s6 = smov [#allocation13]  }
  0xd0   :  { %s1050_s24 = sshll.u32 %s1762_s6, 4  ;;  %s1051_s24 = int_to_ptr.vmem [resolvable:$true] %s1050_s24 }
  0xd3   :  { %933 = vmatpush.bf16.msra.mxu0 %v1534_v10  ;;  %948 = vmatpush.bf16.msrb.mxu1 %v1541_v24 }
  0xd7   :  { %934 = vmatpush.bf16.msra.mxu0 %v1533_v12 }
  0xda   :  { %775 = vmatmul.bf16.vlgmr.msrb.gmra.mxu3 %v278_v1  ;;  %v1554_v1 = vld [vmem:[#allocation11 + $0x28] sm:$0xff] }
  0xdb   :  { %1032 = vmatpush.bf16.msrb.mxu2 %v1554_v1 }
  0xdf   :  { %1033 = vmatpush.bf16.msrb.mxu2 %v1553_v3 }
  0xe3   :  { %1034 = vmatpush.bf16.msrb.mxu2 %v1552_v4 }
  0xe7   :  { %1035 = vmatpush.bf16.msrb.mxu2 %v1551_v2 }
  0xeb   :  { %1036 = vmatpush.bf16.msrb.mxu2 %v1550_v5 }
  0xef   :  { %1037 = vmatpush.bf16.msrb.mxu2 %v1549_v6 }
 0x132   :  { %v692_v17 = vpop.f32.mrf.mxu1 }
 0x137   :  { %v678_v14 = vpop.f32.mrf.mxu0 }
 0x138   :  { %v679_v25 = vadd.f32 %v678_v14, %v345_v22 }
 0x13a   :  { %v694_v26 = vpop.f32.mrf.mxu1  ;;  %v693_v29 = vadd.f32 %v692_v17, %v679_v25 }
 0x13f   :  { %v680_v23 = vpop.f32.mrf.mxu0 }
 0x140   :  { %v706_v20 = vpop.f32.mrf.mxu2  ;;  %v681_v30 = vadd.f32 %v680_v23, %v345_v22  ;;  %v1571_v22 = vld [vmem:[%s1873_s8] ss:$0 sm:$0xff] }
 0x141   :  { %v707_v31 = vadd.f32 %v706_v20, %v693_v29 }
 0x142   :  { %v695_v18 = vadd.f32 %v694_v26, %v681_v30  ;;  %v748_v39 = vpop.f32.mrf.mxu1 }
 0x147   :  { %v734_v32 = vpop.f32.mrf.mxu0 }
 0x148   :  { %v708_v27 = vpop.f32.mrf.mxu2  ;;  %v735_v42 = vadd.f32 %v734_v32, %v346_v36 }
 0x149   :  { %v709_v34 = vadd.f32 %v708_v27, %v695_v18 }
 0x14a   :  { %v749_v48 = vadd.f32 %v748_v39, %v735_v42  ;;  %v750_v51 = vpop.f32.mrf.mxu1 }
 0x14d   :  { %v720_v28 = vpop.f32.mrf.mxu3 }
 0x14e   :  { %v721_v33 = vadd.f32 %v720_v28, %v707_v31 }
 0x14f   :  { %v736_v45 = vpop.f32.mrf.mxu0 }
 0x150   :  { %v785_v37 = vmul.f32 0.1, %v721_v33  ;;  %vm781_vm9 = vcmp.gt.f32.partialorder %v721_v33, 0.0  ;;  %v762_v40 = vpop.f32.mrf.mxu2  ;;  %v737_v49 = vadd.f32 %v736_v45, %v346_v36 }
 0x151   :  { %v763_v50 = vadd.f32 %v762_v40, %v749_v48 }
 0x152   :  { %v789_v43 = vsel %vm781_vm9, %v721_v33, %v785_v37  ;;  %v751_v53 = vadd.f32 %v750_v51, %v737_v49 }
 0x155   :  { %v722_v35 = vpop.f32.mrf.mxu3 }
 0x156   :  { %v723_v38 = vadd.f32 %v722_v35, %v709_v34 }
 0x158   :  { %vm783_vm10 = vcmp.gt.f32.partialorder %v723_v38, 0.0  ;;  %v787_v41 = vmul.f32 0.1, %v723_v38  ;;  %v764_v52 = vpop.f32.mrf.mxu2 }
 0x159   :  { %v765_v55 = vadd.f32 %v764_v52, %v751_v53 }
 0x15a   :  { %v791_v44 = vsel %vm783_vm10, %v723_v38, %v787_v41 }
 0x15b   :  { %v793_v46 = vpack.c.bf16 %v791_v44, %v789_v43 }
 0x15d   :  { %v776_v47 = vpop.f32.mrf.mxu3  ;;  %935 = vmatmul.bf16.vlgmr.msra.gmra.mxu0 %v793_v46 }
 0x15e   :  { %v777_v54 = vadd.f32 %v776_v47, %v763_v50 }
 0x160   :  { %v786_v57 = vmul.f32 0.1, %v777_v54  ;;  %vm782_vm11 = vcmp.gt.f32.partialorder %v777_v54, 0.0 }
 0x162   :  { %v790_v60 = vsel %vm782_vm11, %v777_v54, %v786_v57 }
 0x165   :  { %v778_v56 = vpop.f32.mrf.mxu3 }
 0x166   :  { %v779_v58 = vadd.f32 %v778_v56, %v765_v55 }
 0x168   :  { %vm784_vm12 = vcmp.gt.f32.partialorder %v779_v58, 0.0  ;;  %v788_v59 = vmul.f32 0.1, %v779_v58 }
 0x16a   :  { %v792_v61 = vsel %vm784_vm12, %v779_v58, %v788_v59 }
 0x16b   :  { %v794_v62 = vpack.c.bf16 %v792_v61, %v790_v60 }
 0x16d   :  { %949 = vmatmul.bf16.vlgmr.msrb.gmra.mxu1 %v794_v62 }
 0x1da   :  { %v936_v7 = vpop.f32.mrf.mxu0 }
 0x1db   :  { %v937_v10 = vadd.f32 %v1570_v8, %v936_v7 }
 0x1e2   :  { %v938_v11 = vpop.f32.mrf.mxu0 }
 0x1e3   :  { %v939_v13 = vadd.f32 %v1570_v8, %v938_v11 }
 0x1ea   :  { %v950_v9 = vpop.f32.mrf.mxu1 }
 0x1eb   :  { %v951_v12 = vadd.f32 %v950_v9, %v937_v10 }
 0x1ed   :  { %v957_v15 = vmul.f32 0.1, %v951_v12  ;;  %vm955_vm13 = vcmp.gt.f32.partialorder %v951_v12, 0.0 }
 0x1ef   :  { %v959_v19 = vsel %vm955_vm13, %v951_v12, %v957_v15 }
 0x1f2   :  { %v952_v14 = vpop.f32.mrf.mxu1 }
 0x1f3   :  { %v953_v16 = vadd.f32 %v952_v14, %v939_v13 }
 0x1f5   :  { %vm956_vm14 = vcmp.gt.f32.partialorder %v953_v16, 0.0  ;;  %v958_v17 = vmul.f32 0.1, %v953_v16 }
 0x1f7   :  { %v960_v20 = vsel %vm956_vm14, %v953_v16, %v958_v17 }
 0x1f8   :  { %v961_v21 = vpack.c.bf16 %v960_v20, %v959_v19 }
 0x1fa   :  { %1038 = vmatmul.bf16.vlgmr.msrb.gmra.mxu2 %v961_v21 }
 0x27d   :  { %v1039_v23 = vpop.f32.mrf.mxu2 }
 0x27e   :  { %v1040_v24 = vadd.f32 %v1571_v22, %v1039_v23 }
 0x280   :  { %1044 = vst [vmem:[#allocation13] sm:$0xff] %v1040_v24 }
 0x285   :  { %v1041_v25 = vpop.f32.mrf.mxu2 }
 0x286   :  { %v1042_v26 = vadd.f32 %v1571_v22, %v1041_v25 }
 0x288   :  { %1045 = vst [vmem:[#allocation13 + $0x8] sm:$0xff] %v1042_v26 }
 0x289   :  { %1058 = dma.vmem_to_hbm [thread:$0]  %s1051_s24, 256, %s1053_s26, [#allocation4], %s1754_s21, %s1754_s21, %s1755_s22  }
 0x28a   :  { %1748 = dma.done.wait [#allocation4], 256  }
 0x28b   :  { %1749 = vsyncadd [#allocation4], 4294967040 }
 0x28c   :  { %1063 = vsyncpa [#allocation3], 1 }
 0x28d   :  { %1064 = vsyncpa [#allocation6], 1 }
 0x28e   :  { %1065 = vsyncpa [#allocation9], 1 }
 0x28f   :  { %1066 = vsyncpa [#allocation12], 1 }
 0x290   :  { %1067 = vsyncpa [#allocation4], 1 }

</bundles_post_ra>
